<compile_context>
chip_gen: v7x
topology: tpu7x:2x2x1
jax: 0.10.0
libtpu: 0.0.40
codegen_flags: <defaults>
</compile_context>

<pallas_src>
import jax
import jax.numpy as jnp
from jax.experimental import pallas as pl
from jax.experimental.pallas import tpu as pltpu

N_STATE = 4      # CartPole-v1 observation dim
N_ACTION = 2     # CartPole-v1 action dim
HIDDEN = 50

LANE = 128       # TPU lane width
SUBLANE = 8      # f32 sublane packing

HIDDEN_P = LANE  # 50 -> 128 (lane-dense hidden; native MXU width on v5e too)


def _round_up(n, m):
    return ((n + m - 1) // m) * m


def net_kernel(x_ref, w1_ref, b1_ref, w2_ref, b2_ref, o_ref):
    # fc1: K=4 contraction -> 4 VPU broadcast-multiply-adds (skip the MXU).
    x = x_ref[...]                                   # (TB, 4)   f32
    w1 = w1_ref[...]                                 # (4, 128)  f32
    h = x[:, 0:1] * w1[0:1, :]
    for k in range(1, N_STATE):
        h = h + x[:, k:k + 1] * w1[k:k + 1, :]
    h = jnp.maximum(h + b1_ref[...], 0.0)            # (TB, 128) f32, ReLU

    # out layer: bf16 MXU matmul, f32 accumulate; only real Q columns stored.
    q = jnp.dot(h.astype(jnp.bfloat16), w2_ref[...],
                preferred_element_type=jnp.float32)  # (TB, 2) f32
    o_ref[...] = (q + b2_ref[...]).astype(o_ref.dtype)


def pad_params(w1, b1, w2, b2):
    """Pad/cast parameters ONCE (keep them resident across forward calls)."""
    w1p = jnp.pad(w1, ((0, 0), (0, HIDDEN_P - HIDDEN)))                 # (4, 128) f32
    b1p = jnp.pad(b1, ((0, 0), (0, HIDDEN_P - HIDDEN)))                 # (1, 128) f32
    w2p = jnp.pad(w2, ((0, HIDDEN_P - HIDDEN), (0, 0))).astype(jnp.bfloat16)  # (128, 2)
    b2p = b2                                                            # (1, 2)  f32
    return w1p, b1p, w2p, b2p


def net_forward(x, w1p, b1p, w2p, b2p):
    """Forward pass. x: (B, N_STATE) f32; params already padded via pad_params."""
    B = x.shape[0]

    if B < 256:
        # Single tile; all block dims equal the full array dims (no padding
        # needed, no (8,128) divisibility requirement triggered).
        TB = B
    else:
        # Training minibatches: >=2 tiles so v7x megacore engages both
        # TensorCores, tiles up to 512 rows to amortize per-step overhead.
        TB = min(512, _round_up(-(-B // 2), SUBLANE))
    grid = (pl.cdiv(B, TB),)

    flops = 2 * B * (N_STATE * HIDDEN_P + HIDDEN_P * N_ACTION)
    bytes_accessed = (x.size * x.dtype.itemsize
                      + w1p.size * w1p.dtype.itemsize
                      + b1p.size * b1p.dtype.itemsize
                      + w2p.size * w2p.dtype.itemsize
                      + b2p.size * b2p.dtype.itemsize
                      + B * N_ACTION * 4)

    return pl.pallas_call(
        net_kernel,
        out_shape=jax.ShapeDtypeStruct((B, N_ACTION), jnp.float32),
        grid=grid,
        in_specs=[
            pl.BlockSpec((TB, N_STATE), lambda i: (i, 0)),        # x tile
            pl.BlockSpec((N_STATE, HIDDEN_P), lambda i: (0, 0)),  # w1 (resident)
            pl.BlockSpec((1, HIDDEN_P), lambda i: (0, 0)),        # b1
            pl.BlockSpec((HIDDEN_P, N_ACTION), lambda i: (0, 0)), # w2 (bf16)
            pl.BlockSpec((1, N_ACTION), lambda i: (0, 0)),        # b2
        ],
        out_specs=pl.BlockSpec((TB, N_ACTION), lambda i: (i, 0)),
        compiler_params=pltpu.CompilerParams(
            dimension_semantics=("parallel",)),   # megacore split on v7x
        cost_estimate=pl.CostEstimate(
            flops=flops, transcendentals=0, bytes_accessed=bytes_accessed),
    )(x, w1p, b1p, w2p, b2p)


def init_params(key):
    # Mirrors: fc1.weight.data.normal_(0, 0.1), out.weight.data.normal_(0, 0.1)
    # Biases zero (deterministic synthetic init, not a checkpoint). Weights are
    # stored transposed vs PyTorch so the kernel computes x @ W + b == x @ W.T + b.
    k1, k2 = jax.random.split(key)
    w1 = (0.1 * jax.random.normal(k1, (N_STATE, HIDDEN))).astype(jnp.float32)
    b1 = jnp.zeros((1, HIDDEN), jnp.float32)
    w2 = (0.1 * jax.random.normal(k2, (HIDDEN, N_ACTION))).astype(jnp.float32)
    b2 = jnp.zeros((1, N_ACTION), jnp.float32)
    return w1, b1, w2, b2


if __name__ == "__main__":
    key = jax.random.PRNGKey(0)
    kx, kp = jax.random.split(key)

    batch = 2
    x = jax.random.normal(kx, (batch, N_STATE), dtype=jnp.float32)
    w1, b1, w2, b2 = init_params(kp)
    w1p, b1p, w2p, b2p = pad_params(w1, b1, w2, b2)   # pad/cast once, keep resident

    # Small-batch path (per-env-step action selection): single full-dim tile.
    q_small = net_forward(x, w1p, b1p, w2p, b2p)
    jax.block_until_ready(q_small)

    # Training minibatch: exercises >=2 tiles, ragged last block, parallel grid.
    xb = jax.random.normal(kx, (300, N_STATE), dtype=jnp.float32)
    q_big = net_forward(xb, w1p, b1p, w2p, b2p)
    jax.block_until_ready(q_big)

    # Pure-JAX reference of the same forward pass (unpadded f32 params).
    ref_small = jnp.maximum(x @ w1 + b1, 0.0) @ w2 + b2
    ref_big = jnp.maximum(xb @ w1 + b1, 0.0) @ w2 + b2
    assert q_small.shape == (batch, N_ACTION)
    assert q_big.shape == (300, N_ACTION)
    # bf16 second-layer weights -> ~1e-3 abs error on ~0.1-magnitude Q values.
    assert jnp.allclose(q_small, ref_small, atol=2e-2), "small-batch mismatch"
    assert jnp.allclose(q_big, ref_big, atol=2e-2), "large-batch mismatch"

    print("KERNEL_OK")
</pallas_src>

<mosaic_0001>
module attributes {stable_mosaic.version = 11 : i64} {
  func.func @net_kernel(%arg0: i32, %arg1: memref<2x4xf32, #tpu.memory_space<vmem>>, %arg2: memref<4x128xf32, #tpu.memory_space<vmem>>, %arg3: memref<1x128xf32, #tpu.memory_space<vmem>>, %arg4: memref<128x2xbf16, #tpu.memory_space<vmem>>, %arg5: memref<1x2xf32, #tpu.memory_space<vmem>>, %arg6: memref<2x2xf32, #tpu.memory_space<vmem>>) attributes {dimension_semantics = [#tpu.dimension_semantics<parallel>], iteration_bounds = array<i64: 1>, scalar_prefetch = 0 : i64, scratch_operands = 0 : i64, tpu.core_type = #tpu.core_type<tc>, window_params = [{transform_indices = @transform_0, window_bounds = array<i64: 2, 4>}, {pipeline_mode = #tpu.pipeline_mode<synchronous>, transform_indices = @transform_1, window_bounds = array<i64: 4, 128>}, {pipeline_mode = #tpu.pipeline_mode<synchronous>, transform_indices = @transform_2, window_bounds = array<i64: 1, 128>}, {pipeline_mode = #tpu.pipeline_mode<synchronous>, transform_indices = @transform_3, window_bounds = array<i64: 128, 2>}, {pipeline_mode = #tpu.pipeline_mode<synchronous>, transform_indices = @transform_4, window_bounds = array<i64: 1, 2>}, {transform_indices = @transform_5, window_bounds = array<i64: 2, 2>}]} {
    %c0 = arith.constant 0 : index
    %c0_0 = arith.constant 0 : index
    %0 = vector.load %arg1[%c0, %c0_0] : memref<2x4xf32, #tpu.memory_space<vmem>>, vector<2x4xf32>
    %c0_1 = arith.constant 0 : index
    %c0_2 = arith.constant 0 : index
    %1 = vector.load %arg2[%c0_1, %c0_2] : memref<4x128xf32, #tpu.memory_space<vmem>>, vector<4x128xf32>
    %2 = vector.extract_strided_slice %0 {offsets = [0, 0], sizes = [2, 1], strides = [1, 1]} : vector<2x4xf32> to vector<2x1xf32>
    %3 = vector.extract_strided_slice %1 {offsets = [0, 0], sizes = [1, 128], strides = [1, 1]} : vector<4x128xf32> to vector<1x128xf32>
    %4 = vector.broadcast %2 : vector<2x1xf32> to vector<2x128xf32>
    %5 = vector.broadcast %3 : vector<1x128xf32> to vector<2x128xf32>
    %6 = arith.mulf %4, %5 : vector<2x128xf32>
    %7 = vector.extract_strided_slice %0 {offsets = [0, 1], sizes = [2, 1], strides = [1, 1]} : vector<2x4xf32> to vector<2x1xf32>
    %8 = vector.extract_strided_slice %1 {offsets = [1, 0], sizes = [1, 128], strides = [1, 1]} : vector<4x128xf32> to vector<1x128xf32>
    %9 = vector.broadcast %7 : vector<2x1xf32> to vector<2x128xf32>
    %10 = vector.broadcast %8 : vector<1x128xf32> to vector<2x128xf32>
    %11 = arith.mulf %9, %10 : vector<2x128xf32>
    %12 = arith.addf %6, %11 : vector<2x128xf32>
    %13 = vector.extract_strided_slice %0 {offsets = [0, 2], sizes = [2, 1], strides = [1, 1]} : vector<2x4xf32> to vector<2x1xf32>
    %14 = vector.extract_strided_slice %1 {offsets = [2, 0], sizes = [1, 128], strides = [1, 1]} : vector<4x128xf32> to vector<1x128xf32>
    %15 = vector.broadcast %13 : vector<2x1xf32> to vector<2x128xf32>
    %16 = vector.broadcast %14 : vector<1x128xf32> to vector<2x128xf32>
    %17 = arith.mulf %15, %16 : vector<2x128xf32>
    %18 = arith.addf %12, %17 : vector<2x128xf32>
    %19 = vector.extract_strided_slice %0 {offsets = [0, 3], sizes = [2, 1], strides = [1, 1]} : vector<2x4xf32> to vector<2x1xf32>
    %20 = vector.extract_strided_slice %1 {offsets = [3, 0], sizes = [1, 128], strides = [1, 1]} : vector<4x128xf32> to vector<1x128xf32>
    %21 = vector.broadcast %19 : vector<2x1xf32> to vector<2x128xf32>
    %22 = vector.broadcast %20 : vector<1x128xf32> to vector<2x128xf32>
    %23 = arith.mulf %21, %22 : vector<2x128xf32>
    %24 = arith.addf %18, %23 : vector<2x128xf32>
    %c0_3 = arith.constant 0 : index
    %c0_4 = arith.constant 0 : index
    %25 = vector.load %arg3[%c0_3, %c0_4] : memref<1x128xf32, #tpu.memory_space<vmem>>, vector<1x128xf32>
    %26 = vector.broadcast %25 : vector<1x128xf32> to vector<2x128xf32>
    %27 = arith.addf %24, %26 : vector<2x128xf32>
    %cst = arith.constant 0.000000e+00 : f32
    %28 = vector.broadcast %cst : f32 to vector<2x128xf32>
    %29 = arith.maximumf %27, %28 : vector<2x128xf32>
    %30 = arith.truncf %29 : vector<2x128xf32> to vector<2x128xbf16>
    %c0_5 = arith.constant 0 : index
    %c0_6 = arith.constant 0 : index
    %31 = vector.load %arg4[%c0_5, %c0_6] : memref<128x2xbf16, #tpu.memory_space<vmem>>, vector<128x2xbf16>
    %cst_7 = arith.constant dense<0.000000e+00> : vector<2x2xf32>
    %32 = tpu.matmul %30, %31, %cst_7 {dimension_numbers = #tpu.dot_dimension_numbers<[1], [0], [0], [1], [0, 0, 1, 1], [], []>} : vector<2x128xbf16>, vector<128x2xbf16>, vector<2x2xf32> -> vector<2x2xf32>
    %c0_8 = arith.constant 0 : index
    %c0_9 = arith.constant 0 : index
    %33 = vector.load %arg5[%c0_8, %c0_9] : memref<1x2xf32, #tpu.memory_space<vmem>>, vector<1x2xf32>
    %34 = vector.broadcast %33 : vector<1x2xf32> to vector<2x2xf32>
    %35 = arith.addf %32, %34 : vector<2x2xf32>
    %c0_10 = arith.constant 0 : index
    %c0_11 = arith.constant 0 : index
    %36 = vector.load %arg6[%c0_10, %c0_11] : memref<2x2xf32, #tpu.memory_space<vmem>>, vector<2x2xf32>
    tpu.vector_store %arg6[%c0_10, %c0_11], %35 {strides = array<i32>} : memref<2x2xf32, #tpu.memory_space<vmem>>, vector<2x2xf32>,
    return
  }
  func.func @transform_0(%arg0: i32) -> (i32, i32) {
    %c0_i32 = arith.constant 0 : i32
    %c0_i32_0 = arith.constant 0 : i32
    return %arg0, %c0_i32 : i32, i32
  }
  func.func @transform_1(%arg0: i32) -> (i32, i32) {
    %c0_i32 = arith.constant 0 : i32
    %c0_i32_0 = arith.constant 0 : i32
    %c0_i32_1 = arith.constant 0 : i32
    return %c0_i32, %c0_i32_0 : i32, i32
  }
  func.func @transform_2(%arg0: i32) -> (i32, i32) {
    %c0_i32 = arith.constant 0 : i32
    %c0_i32_0 = arith.constant 0 : i32
    %c0_i32_1 = arith.constant 0 : i32
    return %c0_i32, %c0_i32_0 : i32, i32
  }
  func.func @transform_3(%arg0: i32) -> (i32, i32) {
    %c0_i32 = arith.constant 0 : i32
    %c0_i32_0 = arith.constant 0 : i32
    %c0_i32_1 = arith.constant 0 : i32
    return %c0_i32, %c0_i32_0 : i32, i32
  }
  func.func @transform_4(%arg0: i32) -> (i32, i32) {
    %c0_i32 = arith.constant 0 : i32
    %c0_i32_0 = arith.constant 0 : i32
    %c0_i32_1 = arith.constant 0 : i32
    return %c0_i32, %c0_i32_0 : i32, i32
  }
  func.func @transform_5(%arg0: i32) -> (i32, i32) {
    %c0_i32 = arith.constant 0 : i32
    %c0_i32_0 = arith.constant 0 : i32
    return %arg0, %c0_i32 : i32, i32
  }
}

</mosaic_0001>

<bundles_post_ra>
// kernel: tpu_custom_call.1
= control target key start
LH: loop header
LB: loop body
LE: loop exit
PB: predicated region body
PF: predicated region fallthrough
CT: control target
= control target key end

     0   :  { %v284_v1 = vmov 0   ;;  %v285_v2 = vmov 2   ;;  %v286_v4 = vmov 0.0   ;;  %v287_v6 = vmov 1   ;;  %s369_s0 = inlined_call_operand.vmem [shape: f32[2,4], index: 0, kind: input, shape index: {}]   ;;  %s370_s1 = inlined_call_operand.vmem [shape: f32[4,128], index: 1, kind: input, shape index: {}]   ;;  %s371_s2 = inlined_call_operand.vmem [shape: f32[1,128], index: 2, kind: input, shape index: {}]   ;;  %s372_s3 = inlined_call_operand.vmem [shape: bf16[128,2], index: 3, kind: input, shape index: {}]   ;;  %s373_s4 = inlined_call_operand.vmem [shape: f32[1,2], index: 4, kind: input, shape index: {}]   ;;  %s374_s5 = inlined_call_operand.hbm [shape: f32[2,2], index: 5, kind: output, shape index: {}]  }
   0x1   :  { %v22_v0 = vld [vmem:[%s369_s0] sm:$0x3]  ;;  %247 = vset.pattern.permute.xlu0 %v284_v1  ;;  %249 = vset.pattern.permute.xlu1 %v285_v2  ;;  %v253_v5 = vld [vmem:[%s372_s3 + $0x8] sm:$0xff]   ;;  %v288_v7 = vmov 3   ;;  %v254_v8 = vld [vmem:[%s372_s3 + $0x10] sm:$0xff]  }
   0x2   :  { %v252_v3 = vld [vmem:[%s372_s3] sm:$0xff]   ;;  %26 = vperm.xlu0 %247, %v22_v0   ;;  %45 = vperm.xlu1 %249, %v22_v0  }
   0x3   :  { %220 = vmatprep.subr.bf16.mxu0 %v286_v4 }
   0x4   :  { %221 = vmatpush3.bf16.msra.mxu0 %v252_v3 }
   0x5   :  { %222 = vmatprep.subr.bf16.mxu0 %v286_v4 }
   0x6   :  { %248 = vset.pattern.permute.xlu0 %v287_v6  ;;  %250 = vset.pattern.permute.xlu1 %v288_v7 }
   0x7   :  { %35 = vperm.xlu0 %248, %v22_v0   ;;  %55 = vperm.xlu1 %250, %v22_v0  }
   0x8   :  { %223 = vmatpush3.bf16.msra.mxu0 %v253_v5 }
   0x9   :  { %224 = vmatprep.subr.bf16.mxu0 %v286_v4 }
   0xa   :  { %10 = vsyncpa [#allocation3], 0  ;;  %v255_v9 = vld [vmem:[%s372_s3 + $0x18] sm:$0xff]   ;;  %v256_v10 = vld [vmem:[%s372_s3 + $0x20] sm:$0xff]   ;;  %vm289_vm0 = vmmov 0   ;;  %v29_v14 = vlaneseq  ;;  %s290_s14 = smov [#allocation2]  }
   0xb   :  { %251 = vset.pattern.permute.xlu0 %v288_v7  ;;  %236 = vmatprep.mubr.msk.bf16.mxu0 %vm289_vm0, %v286_v4  ;;  %v257_v11 = vld [vmem:[%s372_s3 + $0x28] sm:$0xff]   ;;  %v258_v12 = vld [vmem:[%s372_s3 + $0x30] sm:$0xff]   ;;  %v259_v13 = vld [vmem:[%s372_s3 + $0x38] sm:$0xff]   ;;  %s193_s15 = sshll.u32 %s290_s14, 4  ;;  %vm185_vm1 = vcmask 9216   ;;  %s194_s15 = int_to_ptr.vmem [resolvable:$true] %s193_s15 }
   0xc   :  { %225 = vmatpush3.bf16.msra.mxu0 %v254_v8  ;;  %v30_v15 = vshrl.u32 %v29_v14, 7  ;;  %v23_v18 = vld [vmem:[%s370_s1] sm:$0xf]  ;;  %p265_p1 = scmp.lt.s32.totalorder %s194_s15, %s194_s15 }
   0xd   :  { %226 = vmatprep.subr.bf16.mxu0 %v286_v4  ;;  %v201_v35 = vld [vmem:[%s371_s2] ss:$0 sm:$0xff]  ;;  %s260_s2 = scalar_lea.vmem %s194_s15, 32 }
   0xe   :  { %v31_v16 = vsub.s32 0, %v30_v15  ;;  %v40_v17 = vsub.s32 1, %v30_v15  ;;  %v50_v20 = vsub.s32 2, %v30_v15  ;;  %v60_v22 = vsub.s32 3, %v30_v15  ;;  %v202_v40 = vld [vmem:[%s373_s4] ss:$0 sm:$0xff]  ;;  %p261_p0 = scmp.ne.s32.totalorder %s194_s15, %s260_s2  ;;  %p266_p2 = scmp.lt.s32.totalorder %s260_s2, %s260_s2 }
  0x10   :  { %227 = vmatpush3.bf16.msra.mxu0 %v255_v9  ;;  %v32_v23 = vrot.slane %v23_v18, %v31_v16  ;;  %v41_v24 = vrot.slane %v23_v18, %v40_v17  ;;  %v51_v25 = vrot.slane %v23_v18, %v50_v20  ;;  %v61_v26 = vrot.slane %v23_v18, %v60_v22  ;;  %p267_p3 = por %p266_p2, %p265_p1 }
  0x11   :  { %228 = vmatprep.subr.bf16.mxu0 %v286_v4 }
  0x12   :  { %p268_p4 = pnand %p267_p3, %p261_p0 }
  0x14   :  { %229 = vmatpush3.bf16.msra.mxu0 %v256_v10 }
  0x15   :  { %230 = vmatprep.subr.bf16.mxu0 %v286_v4 }
  0x18   :  { %231 = vmatpush3.bf16.msra.mxu0 %v257_v11 }
  0x19   :  { %232 = vmatprep.subr.bf16.mxu0 %v286_v4 }
  0x1c   :  { %233 = vmatpush3.bf16.msra.mxu0 %v258_v12 }
  0x1d   :  { %234 = vmatprep.subr.bf16.mxu0 %v286_v4 }
  0x20   :  { %235 = vmatpush3.bf16.msra.mxu0 %v259_v13 }
  0x81   :  { %v27_v19 = vpop.permute.xlu0 %26  ;;  %v46_v21 = vpop.permute.xlu1 %45 }
  0x82   :  { %v33_v29 = vmul.f32 %v32_v23, %v27_v19  ;;  %v52_v31 = vmul.f32 %v51_v25, %v46_v21 }
  0x86   :  { %v36_v27 = vpop.permute.xlu0 %35  ;;  %v56_v28 = vpop.permute.xlu1 %55 }
  0x87   :  { %v42_v30 = vmul.f32 %v41_v24, %v36_v27  ;;  %v62_v33 = vmul.f32 %v61_v26, %v56_v28 }
  0x89   :  { %v43_v32 = vadd.f32 %v42_v30, %v33_v29 }
  0x8b   :  { %v53_v34 = vadd.f32 %v52_v31, %v43_v32 }
  0x8d   :  { %v63_v36 = vadd.f32 %v62_v33, %v53_v34 }
  0x8f   :  { %v71_v37 = vadd.f32 %v201_v35, %v63_v36 }
  0x91   :  { %v72_v38 = vmax.f32 %v71_v37, 0.0 }
  0x93   :  { %v73_v39 = vpack.c.bf16 %v72_v38, %v72_v38 }
  0x95   :  { %237 = vmatmul.mubr.bf16.vlgmr.msra.gmra.mrb[0].mxu0 %v73_v39 }
 0x168   :  { %v179_v41 = vpop.f32.mrb[0].mxu0 }
 0x169   :  { %v180_v42 = vadd.f32 %v202_v40, %v179_v41  ;;  %v238_v43 = vpop.f32.mrb[1].mxu0 }
 0x16a   :  { %v182_v44 = vpop.f32.mrb[2].mxu0 }
 0x16b   :  { %v239_v45 = vpop.f32.mrb[3].mxu0  ;;  %186 = vst.msk [vmem:[#allocation2] sm:$0x3] %vm185_vm1, %v180_v42 }
 0x16c   :  { %271 = shalt.err (!%p268_p4)
}
 0x16d   :  { %s272_s4 = scalar_lea.hbm %s374_s5, 32 }
 0x16e   :  { %p273_p5 = scmp.ne.s32.totalorder %s374_s5, %s272_s4  ;;  %p276_p6 = scmp.lt.u32.totalorder %s272_s4, %s374_s5 }
 0x170   :  { %p278_p7 = pnand %p276_p6, %p273_p5 }
 0x172   :  { %281 = shalt.err (!%p278_p7)
}
 0x173   :  { %196 = dma.vmem_to_hbm [thread:$0]  %s194_s15, 32, %s374_s5, [#allocation3]  }
 0x174   :  { %282 = dma.done.wait [#allocation3], 32  }
 0x175   :  { %283 = vsyncadd [#allocation3], 4294967264 }
 0x176   :  { %200 = vsyncpa [#allocation3], 1 }

</bundles_post_ra>
